<compile_context>
chip_gen: v7x
topology: tpu7x:2x2x1
jax: 0.10.0
libtpu: 0.0.40
codegen_flags: <defaults>
</compile_context>

<pallas_src>
import functools
import math

import jax
import jax.numpy as jnp
from jax.experimental import pallas as pl
from jax.experimental.pallas import tpu as pltpu

EPS = 1e-6
NEG_INF = -1e9


# ------------------------- generation-aware tuning --------------------------

@functools.lru_cache(maxsize=None)
def _vmem_capacity_bytes():
    """Physical VMEM of the local TPU; conservative (v7x-sized) fallback."""
    try:
        info = pltpu.get_tpu_info()
        cap = getattr(info, "vmem_capacity_bytes", None)
        if cap:
            return int(cap)
    except Exception:
        pass
    return 64 * 1024 * 1024


def _small_vmem():
    return _vmem_capacity_bytes() <= 64 * 1024 * 1024       # v7x-class


def _vmem_limit_bytes():
    # Leave headroom for compiler scratch; cap at 100 MiB on big-VMEM parts.
    cap = _vmem_capacity_bytes()
    return int(max(32 * 1024 * 1024, min(cap - 24 * 1024 * 1024,
                                         100 * 1024 * 1024)))


def _compiler_params(dim_sems):
    return pltpu.CompilerParams(
        dimension_semantics=dim_sems,
        vmem_limit_bytes=_vmem_limit_bytes(),
    )


def _choose_tm(M):
    """M-tile: 256 on small-VMEM chips, 512 otherwise; padded tail handled by
    the wrappers, so no whole-M un-pipelined fallback at awkward sizes."""
    target = 256 if _small_vmem() else 512
    for t in (target, 256, 128):
        if M >= t:
            return t
    return max(8, ((M + 7) // 8) * 8)          # tiny M: one 8-aligned block


def _choose_tf(F):
    """d_ff tile for the streamed FFN weights (multiple of 128, or full F)."""
    target = 512 if _small_vmem() else 1024
    for t in (target, 512, 256, 128):
        if F >= t and F % t == 0:
            return t
    return F


def _pad_rows(x2d, tm):
    M = x2d.shape[0]
    pad = (-M) % tm
    if pad:
        x2d = jnp.pad(x2d, ((0, pad), (0, 0)))
    return x2d, pad


# ------------------------- shared math ---------------------------------------

def _layernorm_f32(x, a, b, feat):
    """Matches the custom torch LayerNorm: unbiased std, normalize by (std+eps)."""
    mean = jnp.mean(x, axis=-1, keepdims=True)
    xc = x - mean
    var = jnp.sum(xc * xc, axis=-1, keepdims=True) / (feat - 1)
    inv = pl.reciprocal(jnp.sqrt(var) + EPS)          # exact; only (rows, 1) wide
    return a * (xc * inv) + b


# ------------------------- Pallas kernels ------------------------------------

def _ln_qkv_kernel(x_ref, a_ref, b_ref, w_ref, bias_ref, o_ref, *, feat):
    """LayerNorm (fp32) + fused [D,3D] QKV projection; bf16 weights, bf16 out."""
    x = x_ref[...]                                            # (TM, D) fp32
    nx = _layernorm_f32(x, a_ref[...], b_ref[...], feat)
    y = jnp.dot(nx.astype(jnp.bfloat16), w_ref[...],          # w already bf16
                preferred_element_type=jnp.float32)           # (TM, 3D) fp32
    o_ref[...] = (y + bias_ref[...]).astype(o_ref.dtype)      # bf16 out


def _attn_out_kernel(qkv_ref, bias_ref, wo_ref, bo_ref, res_ref, o_ref):
    """One (batch, head) step: softmax(q k^T / sqrt(dk) + bias) v, then
    accumulate ctx_h @ wo[h] + (residual + bo) into the resident output block.
    Grid = (B, H); H is the out-projection reduction ('arbitrary')."""
    h = pl.program_id(1)

    @pl.when(h == 0)
    def _():                                                   # init accumulator
        o_ref[...] = res_ref[...] + bo_ref[...]                # x + bo (fp32)

    _, _, _, S, dk = qkv_ref.shape
    qkv = qkv_ref[...].reshape(3, S, dk)                       # bf16
    q, k, v = qkv[0], qkv[1], qkv[2]

    # Fold 1/sqrt(dk) into q (S*dk mults) instead of scaling the (S,S) scores.
    scale = 1.0 / math.sqrt(dk)
    qs = (q.astype(jnp.float32) * scale).astype(jnp.bfloat16)

    s = jax.lax.dot_general(qs, k, (((1,), (1,)), ((), ())),
                            preferred_element_type=jnp.float32)   # (S, S) fp32
    s = s + bias_ref[0]                                        # additive mask
    s = s - jnp.max(s, axis=-1, keepdims=True)
    e = jnp.exp(s)
    p = e * pl.reciprocal(jnp.sum(e, axis=-1, keepdims=True), approx=True)
    ctx = jnp.dot(p.astype(jnp.bfloat16), v,
                  preferred_element_type=jnp.float32)          # (S, dk) fp32
    o_ref[0] = o_ref[0] + jnp.dot(ctx.astype(jnp.bfloat16), wo_ref[...],
                                  preferred_element_type=jnp.float32)


def _ln_ffn_res_kernel(x_ref, a_ref, b_ref, w1_ref, b1_ref, w2_ref, b2_ref,
                       o_ref, nx_ref, *, feat):
    """LayerNorm + FFN with the hidden dim streamed in TF-wide chunks.
    Grid = (M-tiles, F-tiles); the second matmul accumulates into o_ref."""
    f = pl.program_id(1)

    @pl.when(f == 0)
    def _():
        x = x_ref[...]                                         # (TM, D) fp32
        nx_ref[...] = _layernorm_f32(x, a_ref[...], b_ref[...],
                                     feat).astype(jnp.bfloat16)
        o_ref[...] = x + b2_ref[...]                           # residual + b2

    hid = jnp.dot(nx_ref[...], w1_ref[...],                    # (TM, TF) fp32
                  preferred_element_type=jnp.float32)
    hid = jnp.maximum(hid + b1_ref[...], 0.0)                  # ReLU in fp32
    o_ref[...] += jnp.dot(hid.astype(jnp.bfloat16), w2_ref[...],
                          preferred_element_type=jnp.float32)


# ------------------------- pallas_call wrappers ------------------------------

def ln_qkv_proj(x2d, ln_a, ln_b, wqkv, bqkv):
    M, D = x2d.shape
    N = wqkv.shape[1]
    TM = _choose_tm(M)
    xp, pad = _pad_rows(x2d, TM)
    Mp = M + pad
    out = pl.pallas_call(
        functools.partial(_ln_qkv_kernel, feat=D),
        out_shape=jax.ShapeDtypeStruct((Mp, N), jnp.bfloat16),
        grid=(Mp // TM,),
        in_specs=[pl.BlockSpec((TM, D), lambda i: (i, 0)),
                  pl.BlockSpec((1, D), lambda i: (0, 0)),
                  pl.BlockSpec((1, D), lambda i: (0, 0)),
                  pl.BlockSpec((D, N), lambda i: (0, 0)),
                  pl.BlockSpec((1, N), lambda i: (0, 0))],
        out_specs=pl.BlockSpec((TM, N), lambda i: (i, 0)),
        compiler_params=_compiler_params(("parallel",)),
    )(xp, ln_a.reshape(1, D), ln_b.reshape(1, D), wqkv, bqkv.reshape(1, N))
    return out[:M] if pad else out


def attention_outproj(qkv_hm, mask_bias, wo, bo, x_res):
    """qkv_hm: (3, B, H, S, dk) bf16; returns x_res + MHA(...) @ wo + bo."""
    _, B, H, S, dk = qkv_hm.shape
    D = H * dk
    return pl.pallas_call(
        _attn_out_kernel,
        out_shape=jax.ShapeDtypeStruct((B, S, D), x_res.dtype),
        grid=(B, H),
        in_specs=[pl.BlockSpec((3, 1, 1, S, dk), lambda b, h: (0, b, h, 0, 0)),
                  pl.BlockSpec((1, 1, S), lambda b, h: (b, 0, 0)),
                  pl.BlockSpec((dk, D), lambda b, h: (h, 0)),
                  pl.BlockSpec((1, D), lambda b, h: (0, 0)),
                  pl.BlockSpec((1, S, D), lambda b, h: (b, 0, 0))],
        out_specs=pl.BlockSpec((1, S, D), lambda b, h: (b, 0, 0)),
        compiler_params=_compiler_params(("parallel", "arbitrary")),
    )(qkv_hm, mask_bias, wo, bo.reshape(1, D), x_res)


def ln_ffn_residual(x2d, ln_a, ln_b, w1, b1, w2, b2):
    M, D = x2d.shape
    F = w1.shape[1]
    TM = _choose_tm(M)
    TF = _choose_tf(F)
    xp, pad = _pad_rows(x2d, TM)
    Mp = M + pad
    out = pl.pallas_call(
        functools.partial(_ln_ffn_res_kernel, feat=D),
        out_shape=jax.ShapeDtypeStruct((Mp, D), x2d.dtype),
        grid=(Mp // TM, F // TF),
        in_specs=[pl.BlockSpec((TM, D), lambda i, f: (i, 0)),
                  pl.BlockSpec((1, D), lambda i, f: (0, 0)),
                  pl.BlockSpec((1, D), lambda i, f: (0, 0)),
                  pl.BlockSpec((D, TF), lambda i, f: (0, f)),
                  pl.BlockSpec((1, TF), lambda i, f: (0, f)),
                  pl.BlockSpec((TF, D), lambda i, f: (f, 0)),
                  pl.BlockSpec((1, D), lambda i, f: (0, 0))],
        out_specs=pl.BlockSpec((TM, D), lambda i, f: (i, 0)),
        scratch_shapes=[pltpu.VMEM((TM, D), jnp.bfloat16)],
        compiler_params=_compiler_params(("parallel", "arbitrary")),
    )(xp, ln_a.reshape(1, D), ln_b.reshape(1, D), w1, b1.reshape(1, F),
      w2, b2.reshape(1, D))
    return out[:M] if pad else out


# ------------------------- EncoderLayer forward ------------------------------

def encoder_layer_forward(x, mask, p, num_heads):
    """EncoderLayer.forward(x, mask):
         x = x + self_attn(norm(x), norm(x), norm(x), mask)
         x = x + feed_forward(norm(x))
       (dropout_p = 0.0 -> Dropout is the identity)
    """
    B, S, D = x.shape
    M = B * S
    dk = D // num_heads
    # masked_fill(mask == 0, -1e9) as an additive bias, built once per forward.
    mask_bias = jnp.where(mask == 0, jnp.float32(NEG_INF), jnp.float32(0.0))
    x2d = x.reshape(M, D)

    # --- Sublayer 0: LN + QKV -> head-major attention + out-proj + residual --
    qkv = ln_qkv_proj(x2d, p["ln1_a"], p["ln1_b"], p["wqkv"], p["bqkv"])  # (M,3D) bf16
    # Head-major relayout (single bf16 HBM pass in XLA): (3, B, H, S, dk).
    # TODO(synk): emit this layout directly from kernel 1 (in-kernel relayout)
    #             to remove the extra bf16 pass.
    qkv_hm = qkv.reshape(B, S, 3, num_heads, dk).transpose(2, 0, 3, 1, 4)
    x_attn = attention_outproj(qkv_hm, mask_bias, p["wo"], p["bo"], x)    # (B,S,D) fp32

    # --- Sublayer 1: LN + position-wise FFN (+ residual), d_ff streamed ------
    out2d = ln_ffn_residual(x_attn.reshape(M, D), p["ln2_a"], p["ln2_b"],
                            p["ffn_w1"], p["ffn_b1"], p["ffn_w2"], p["ffn_b2"])
    return out2d.reshape(B, S, D)


def init_layer_params(key, d_model, d_ff):
    def dense(k, fan_in, fan_out):
        kw, kb = jax.random.split(k)
        bound = 1.0 / math.sqrt(fan_in)
        w = jax.random.uniform(kw, (fan_in, fan_out), jnp.float32, -bound, bound)
        b = jax.random.uniform(kb, (fan_out,), jnp.float32, -bound, bound)
        return w, b

    key, *ks = jax.random.split(key, 7)
    wq, bq = dense(ks[0], d_model, d_model)
    wk, bk = dense(ks[1], d_model, d_model)
    wv, bv = dense(ks[2], d_model, d_model)
    wo, bo = dense(ks[3], d_model, d_model)
    w1, b1 = dense(ks[4], d_model, d_ff)
    w2, b2 = dense(ks[5], d_ff, d_model)

    bf16 = lambda t: t.astype(jnp.bfloat16)     # pre-cast matmul params in HBM
    return {
        # Q/K/V projections fused into a single [D, 3D] matmul (bf16 in HBM).
        "wqkv": bf16(jnp.concatenate([wq, wk, wv], axis=1)),
        "bqkv": bf16(jnp.concatenate([bq, bk, bv], axis=0)),
        "wo": bf16(wo), "bo": bf16(bo),
        "ffn_w1": bf16(w1), "ffn_b1": bf16(b1),
        "ffn_w2": bf16(w2), "ffn_b2": bf16(b2),
        # LayerNorm params stay fp32 (they feed fp32 LN math; negligible size).
        "ln1_a": jnp.ones((d_model,), jnp.float32),
        "ln1_b": jnp.zeros((d_model,), jnp.float32),
        "ln2_a": jnp.ones((d_model,), jnp.float32),
        "ln2_b": jnp.zeros((d_model,), jnp.float32),
    }


if __name__ == "__main__":
    B, S, D = 2, 8, 32
    H, D_FF = 4, 64

    key = jax.random.PRNGKey(0)
    kx, kp = jax.random.split(key)
    x = jax.random.normal(kx, (B, S, D), jnp.float32)

    # mask: (B, 1, S); 1 = attend, 0 = masked key position.
    mask = jnp.ones((B, 1, S), jnp.float32)
    mask = mask.at[1, 0, S - 2:].set(0.0)

    params = init_layer_params(kp, D, D_FF)

    out = encoder_layer_forward(x, mask, params, H)
    jax.block_until_ready(out)
    assert out.shape == (B, S, D) and out.dtype == jnp.float32
    assert bool(jnp.isfinite(out).all())
    print("KERNEL_OK")
</pallas_src>

<mosaic_0001>
module attributes {stable_mosaic.version = 11 : i64} {
  func.func @_ln_qkv_kernel(%arg0: i32, %arg1: memref<16x32xf32, #tpu.memory_space<vmem>>, %arg2: memref<1x32xf32, #tpu.memory_space<vmem>>, %arg3: memref<1x32xf32, #tpu.memory_space<vmem>>, %arg4: memref<32x96xbf16, #tpu.memory_space<vmem>>, %arg5: memref<1x96xbf16, #tpu.memory_space<vmem>>, %arg6: memref<16x96xbf16, #tpu.memory_space<vmem>>) attributes {dimension_semantics = [#tpu.dimension_semantics<parallel>], iteration_bounds = array<i64: 1>, scalar_prefetch = 0 : i64, scratch_operands = 0 : i64, tpu.core_type = #tpu.core_type<tc>, window_params = [{transform_indices = @transform_0, window_bounds = array<i64: 16, 32>}, {pipeline_mode = #tpu.pipeline_mode<synchronous>, transform_indices = @transform_1, window_bounds = array<i64: 1, 32>}, {pipeline_mode = #tpu.pipeline_mode<synchronous>, transform_indices = @transform_2, window_bounds = array<i64: 1, 32>}, {pipeline_mode = #tpu.pipeline_mode<synchronous>, transform_indices = @transform_3, window_bounds = array<i64: 32, 96>}, {pipeline_mode = #tpu.pipeline_mode<synchronous>, transform_indices = @transform_4, window_bounds = array<i64: 1, 96>}, {transform_indices = @transform_5, window_bounds = array<i64: 16, 96>}]} {
    %c0 = arith.constant 0 : index
    %c0_0 = arith.constant 0 : index
    %0 = vector.load %arg1[%c0, %c0_0] : memref<16x32xf32, #tpu.memory_space<vmem>>, vector<16x32xf32>
    %c0_1 = arith.constant 0 : index
    %c0_2 = arith.constant 0 : index
    %1 = vector.load %arg2[%c0_1, %c0_2] : memref<1x32xf32, #tpu.memory_space<vmem>>, vector<1x32xf32>
    %c0_3 = arith.constant 0 : index
    %c0_4 = arith.constant 0 : index
    %2 = vector.load %arg3[%c0_3, %c0_4] : memref<1x32xf32, #tpu.memory_space<vmem>>, vector<1x32xf32>
    %cst = arith.constant dense<0.000000e+00> : vector<16xf32>
    %3 = vector.multi_reduction <add>, %0, %cst [1] : vector<16x32xf32> to vector<16xf32>
    %4 = vector.shape_cast %3 : vector<16xf32> to vector<16x1xf32>
    %cst_5 = arith.constant 3.200000e+01 : f32
    %5 = vector.broadcast %cst_5 : f32 to vector<16x1xf32>
    %6 = arith.divf %4, %5 : vector<16x1xf32>
    %7 = vector.broadcast %6 : vector<16x1xf32> to vector<16x32xf32>
    %8 = arith.subf %0, %7 : vector<16x32xf32>
    %9 = arith.mulf %8, %8 : vector<16x32xf32>
    %cst_6 = arith.constant dense<0.000000e+00> : vector<16xf32>
    %10 = vector.multi_reduction <add>, %9, %cst_6 [1] : vector<16x32xf32> to vector<16xf32>
    %11 = vector.shape_cast %10 : vector<16xf32> to vector<16x1xf32>
    %cst_7 = arith.constant 3.100000e+01 : f32
    %12 = vector.broadcast %cst_7 : f32 to vector<16x1xf32>
    %13 = arith.divf %11, %12 : vector<16x1xf32>
    %14 = math.sqrt %13 : vector<16x1xf32>
    %cst_8 = arith.constant 9.99999997E-7 : f32
    %15 = vector.broadcast %cst_8 : f32 to vector<16x1xf32>
    %16 = arith.addf %14, %15 : vector<16x1xf32>
    %17 = tpu.reciprocal %16 : vector<16x1xf32> -> vector<16x1xf32>
    %18 = vector.broadcast %17 : vector<16x1xf32> to vector<16x32xf32>
    %19 = arith.mulf %8, %18 : vector<16x32xf32>
    %20 = vector.broadcast %1 : vector<1x32xf32> to vector<16x32xf32>
    %21 = arith.mulf %20, %19 : vector<16x32xf32>
    %22 = vector.broadcast %2 : vector<1x32xf32> to vector<16x32xf32>
    %23 = arith.addf %21, %22 : vector<16x32xf32>
    %24 = arith.truncf %23 : vector<16x32xf32> to vector<16x32xbf16>
    %c0_9 = arith.constant 0 : index
    %c0_10 = arith.constant 0 : index
    %25 = vector.load %arg4[%c0_9, %c0_10] : memref<32x96xbf16, #tpu.memory_space<vmem>>, vector<32x96xbf16>
    %cst_11 = arith.constant dense<0.000000e+00> : vector<16x96xf32>
    %26 = tpu.matmul %24, %25, %cst_11 {dimension_numbers = #tpu.dot_dimension_numbers<[1], [0], [0], [1], [0, 0, 1, 1], [], []>} : vector<16x32xbf16>, vector<32x96xbf16>, vector<16x96xf32> -> vector<16x96xf32>
    %c0_12 = arith.constant 0 : index
    %c0_13 = arith.constant 0 : index
    %27 = vector.load %arg5[%c0_12, %c0_13] : memref<1x96xbf16, #tpu.memory_space<vmem>>, vector<1x96xbf16>
    %28 = arith.extf %27 : vector<1x96xbf16> to vector<1x96xf32>
    %29 = vector.broadcast %28 : vector<1x96xf32> to vector<16x96xf32>
    %30 = arith.addf %26, %29 : vector<16x96xf32>
    %31 = arith.truncf %30 : vector<16x96xf32> to vector<16x96xbf16>
    %c0_14 = arith.constant 0 : index
    %c0_15 = arith.constant 0 : index
    %32 = vector.load %arg6[%c0_14, %c0_15] : memref<16x96xbf16, #tpu.memory_space<vmem>>, vector<16x96xbf16>
    tpu.vector_store %arg6[%c0_14, %c0_15], %31 {strides = array<i32>} : memref<16x96xbf16, #tpu.memory_space<vmem>>, vector<16x96xbf16>,
    return
  }
  func.func @transform_0(%arg0: i32) -> (i32, i32) {
    %c0_i32 = arith.constant 0 : i32
    %c0_i32_0 = arith.constant 0 : i32
    return %arg0, %c0_i32 : i32, i32
  }
  func.func @transform_1(%arg0: i32) -> (i32, i32) {
    %c0_i32 = arith.constant 0 : i32
    %c0_i32_0 = arith.constant 0 : i32
    %c0_i32_1 = arith.constant 0 : i32
    return %c0_i32, %c0_i32_0 : i32, i32
  }
  func.func @transform_2(%arg0: i32) -> (i32, i32) {
    %c0_i32 = arith.constant 0 : i32
    %c0_i32_0 = arith.constant 0 : i32
    %c0_i32_1 = arith.constant 0 : i32
    return %c0_i32, %c0_i32_0 : i32, i32
  }
  func.func @transform_3(%arg0: i32) -> (i32, i32) {
    %c0_i32 = arith.constant 0 : i32
    %c0_i32_0 = arith.constant 0 : i32
    %c0_i32_1 = arith.constant 0 : i32
    return %c0_i32, %c0_i32_0 : i32, i32
  }
  func.func @transform_4(%arg0: i32) -> (i32, i32) {
    %c0_i32 = arith.constant 0 : i32
    %c0_i32_0 = arith.constant 0 : i32
    %c0_i32_1 = arith.constant 0 : i32
    return %c0_i32, %c0_i32_0 : i32, i32
  }
  func.func @transform_5(%arg0: i32) -> (i32, i32) {
    %c0_i32 = arith.constant 0 : i32
    %c0_i32_0 = arith.constant 0 : i32
    return %arg0, %c0_i32 : i32, i32
  }
}

</mosaic_0001>

<bundles_post_ra>
// kernel: tpu_custom_call.1
= control target key start
LH: loop header
LB: loop body
LE: loop exit
PB: predicated region body
PF: predicated region fallthrough
CT: control target
= control target key end

     0   :  { %10 = vsyncpa [#allocation3], 0  ;;  %s415_s0 = inlined_call_operand.hbm [shape: f32[16,32], index: 0, kind: input, shape index: {}]   ;;  %s416_s1 = inlined_call_operand.vmem [shape: f32[1,32], index: 1, kind: input, shape index: {}]   ;;  %s417_s2 = inlined_call_operand.vmem [shape: f32[1,32], index: 2, kind: input, shape index: {}]   ;;  %s418_s3 = inlined_call_operand.hbm [shape: bf16[32,96], index: 3, kind: input, shape index: {}]   ;;  %s419_s4 = inlined_call_operand.vmem [shape: bf16[1,96], index: 4, kind: input, shape index: {}]   ;;  %s420_s5 = inlined_call_operand.hbm [shape: bf16[16,96], index: 5, kind: output, shape index: {}]  }
   0x1   :  { %11 = vsyncpa [#allocation6], 0 }
   0x2   :  { %12 = vsyncpa [#allocation4], 0  ;;  %s320_s18 = smov [#allocation2]   ;;  %s248_s22 = scalar_lea.hbm %s415_s0, 256 }
   0x3   :  { %s18_s19 = sshll.u32 %s320_s18, 4  ;;  %p249_p0 = scmp.ne.s32.totalorder %s415_s0, %s248_s22  ;;  %s19_s19 = int_to_ptr.vmem [resolvable:$true] %s18_s19 }
   0x4   :  { %p252_p1 = scmp.lt.u32.totalorder %s248_s22, %s415_s0 }
   0x6   :  { %p254_p2 = pnand %p252_p1, %p249_p0 }
   0x8   :  { %257 = shalt.err (!%p254_p2)
}
   0x9   :  { %s258_s27 = scalar_lea.vmem %s19_s19, 256  ;;  %p263_p4 = scmp.lt.s32.totalorder %s19_s19, %s19_s19 }
   0xa   :  { %p259_p3 = scmp.ne.s32.totalorder %s19_s19, %s258_s27  ;;  %p264_p5 = scmp.lt.s32.totalorder %s258_s27, %s258_s27 }
   0xc   :  { %p265_p6 = por %p264_p5, %p263_p4 }
   0xe   :  { %p266_p7 = pnand %p265_p6, %p259_p3 }
  0x10   :  { %269 = shalt.err (!%p266_p7)
}
  0x11   :  { %s321_s28 = smov 128   ;;  %s322_s29 = smov 8  }
  0x12   :  { %24 = dma.hbm_to_vmem [thread:$0]  %s415_s0, 256, %s19_s19, [#allocation3], %s321_s28, %s321_s28, %s322_s29  }
  0x13   :  { %s323_s7 = smov [#allocation5]   ;;  %s270_s11 = scalar_lea.hbm %s418_s3, 256 }
  0x14   :  { %s34_s8 = sshll.u32 %s323_s7, 4  ;;  %p271_p8 = scmp.ne.s32.totalorder %s418_s3, %s270_s11  ;;  %s35_s8 = int_to_ptr.vmem [resolvable:$true] %s34_s8 }
  0x15   :  { %p274_p9 = scmp.lt.u32.totalorder %s270_s11, %s418_s3 }
  0x17   :  { %p276_p10 = pnand %p274_p9, %p271_p8 }
  0x19   :  { %279 = shalt.err (!%p276_p10)
}
  0x1a   :  { %s280_s16 = scalar_lea.vmem %s35_s8, 256  ;;  %p285_p12 = scmp.lt.s32.totalorder %s35_s8, %s35_s8 }
  0x1b   :  { %p281_p11 = scmp.ne.s32.totalorder %s35_s8, %s280_s16  ;;  %p286_p13 = scmp.lt.s32.totalorder %s280_s16, %s280_s16 }
  0x1d   :  { %p287_p0 = por %p286_p13, %p285_p12 }
  0x1f   :  { %p288_p1 = pnand %p287_p0, %p281_p11 }
  0x21   :  { %291 = shalt.err (!%p288_p1)
}
  0x22   :  { %s324_s0 = smov 64   ;;  %s325_s17 = smov 4  }
  0x23   :  { %40 = dma.hbm_to_vmem [thread:$0]  %s418_s3, 256, %s35_s8, [#allocation6], %s324_s0, %s324_s0, %s325_s17  }
  0x24   :  { %314 = dma.done.wait [#allocation3], 256  }
  0x25   :  { %315 = vsyncadd [#allocation3], 4294967040 }
  0x26   :  { %316 = dma.done.wait [#allocation6], 256  }
  0x27   :  { %317 = vsyncadd [#allocation6], 4294967040  ;;  %vm54_vm0 = vcmask 261120   ;;  %v50_v0 = vld [vmem:[#allocation2] sm:$0xff]  ;;  %v51_v1 = vld [vmem:[#allocation2 + $0x8] sm:$0xff]  ;;  %v326_v15 = vmov 0.0   ;;  %v120_v44 = vlaneseq }
  0x28   :  { %v55_v2 = vsel %vm54_vm0, %v50_v0, 0.0  ;;  %v58_v3 = vsel %vm54_vm0, %v51_v1, 0.0  ;;  %v238_v14 = vld [vmem:[#allocation5] sm:$0xff]   ;;  %221 = vmatprep.subr.bf16.mxu0 %v326_v15  ;;  %vm327_vm1 = vmmov 0   ;;  %v239_v16 = vld [vmem:[#allocation5 + $0x8] sm:$0xff]   ;;  %vm188_vm6 = vcmask 781312  }
  0x29   :  { %56 = vadd.xlane.f32.xlu0 %v55_v2  ;;  %225 = vmatprep.mubr.msk.bf16.mxu0 %vm327_vm1, %v326_v15  ;;  %v209_v35 = vld [vmem:[%s416_s1] ss:$0 sm:$0xff]  ;;  %v121_v45 = vshrl.u32 %v120_v44, 7  ;;  %s328_s1 = smov [#allocation7]  }
  0x2a   :  { %222 = vmatpush3.bf16.msra.mxu0 %v238_v14  ;;  %v210_v39 = vld [vmem:[%s417_s2] ss:$0 sm:$0xff]  ;;  %s196_s2 = sshll.u32 %s328_s1, 4  ;;  %s197_s2 = int_to_ptr.vmem [resolvable:$true] %s196_s2 }
  0x2b   :  { %223 = vmatprep.subr.bf16.mxu0 %v326_v15  ;;  %v118_v46 = vld [vmem:[%s419_s4] sm:$0x1]  ;;  %v122_v48 = vsub.s32 0, %v121_v45  ;;  %s292_s25 = scalar_lea.vmem %s197_s2, 128  ;;  %p297_p3 = scmp.lt.s32.totalorder %s197_s2, %s197_s2 }
  0x2c   :  { %v119_v47 = vunpack.c.l.bf16 %v118_v46  ;;  %p293_p2 = scmp.ne.s32.totalorder %s197_s2, %s292_s25  ;;  %p298_p4 = scmp.lt.s32.totalorder %s292_s25, %s292_s25 }
  0x2d   :  { %59 = vadd.xlane.f32.xlu0 %v58_v3 }
  0x2e   :  { %224 = vmatpush3.bf16.msra.mxu0 %v239_v16  ;;  %v123_v49 = vrot.slane %v119_v47, %v122_v48  ;;  %p299_p5 = por %p298_p4, %p297_p3 }
  0x30   :  { %p300_p6 = pnand %p299_p5, %p293_p2 }
  0xb6   :  { %v57_v4 = vpop.xlane.xlu0 %56 }
  0xb7   :  { %v62_v5 = vmul.f32 0.03125, %v57_v4 }
  0xb9   :  { %v64_v6 = vsub.f32 %v50_v0, %v62_v5 }
  0xba   :  { %v60_v7 = vpop.xlane.xlu0 %59 }
  0xbb   :  { %v63_v8 = vmul.f32 0.03125, %v60_v7  ;;  %v66_v9 = vmul.f32 %v64_v6, %v64_v6 }
  0xbd   :  { %v65_v10 = vsub.f32 %v51_v1, %v63_v8  ;;  %v68_v11 = vsel %vm54_vm0, %v66_v9, 0.0 }
  0xbe   :  { %69 = vadd.xlane.f32.xlu1 %v68_v11 }
  0xbf   :  { %v67_v12 = vmul.f32 %v65_v10, %v65_v10 }
  0xc1   :  { %v71_v13 = vsel %vm54_vm0, %v67_v12, 0.0 }
  0xc2   :  { %72 = vadd.xlane.f32.xlu1 %v71_v13 }
 0x14b   :  { %v70_v17 = vpop.xlane.xlu1 %69 }
 0x14c   :  { %v75_v18 = vmul.f32 0.032258064, %v70_v17 }
 0x14e   :  { %240 = vrsqrt.f32 %v75_v18  ;;  %vm79_vm2 = vcmp.eq.f32.partialorder %v75_v18, inf  ;;  %v82_v23 = vand.u32 2147483648, %v75_v18  ;;  %vm81_vm3 = vcmp.eq.f32.partialorder %v75_v18, 0.0 }
 0x14f   :  { %v73_v19 = vpop.xlane.xlu1 %72 }
 0x150   :  { %v76_v20 = vmul.f32 0.032258064, %v73_v19 }
 0x152   :  { %242 = vrsqrt.f32 %v76_v20  ;;  %vm86_vm4 = vcmp.eq.f32.partialorder %v76_v20, inf  ;;  %v89_v29 = vand.u32 2147483648, %v76_v20  ;;  %vm88_vm5 = vcmp.eq.f32.partialorder %v76_v20, 0.0 }
 0x158   :  { %v241_v21 = vpop.eup %240 }
 0x159   :  { %v78_v22 = vmul.f32 %v241_v21, %v75_v18 }
 0x15b   :  { %v80_v24 = vsel %vm79_vm2, %v75_v18, %v78_v22 }
 0x15c   :  { %v243_v25 = vpop.eup %242  ;;  %v83_v26 = vsel %vm81_vm3, %v82_v23, %v80_v24 }
 0x15d   :  { %v91_v27 = vadd.f32 1e-06, %v83_v26  ;;  %v85_v28 = vmul.f32 %v243_v25, %v76_v20 }
 0x15f   :  { %244 = vrcp.f32 %v91_v27  ;;  %v87_v30 = vsel %vm86_vm4, %v76_v20, %v85_v28 }
 0x160   :  { %v90_v31 = vsel %vm88_vm5, %v89_v29, %v87_v30 }
 0x161   :  { %v92_v32 = vadd.f32 1e-06, %v90_v31 }
 0x163   :  { %246 = vrcp.f32 %v92_v32 }
 0x169   :  { %v245_v33 = vpop.eup %244 }
 0x16a   :  { %v95_v34 = vmul.f32 %v245_v33, %v64_v6 }
 0x16c   :  { %v103_v38 = vmul.f32 %v209_v35, %v95_v34 }
 0x16d   :  { %v247_v36 = vpop.eup %246 }
 0x16e   :  { %v96_v37 = vmul.f32 %v247_v36, %v65_v10  ;;  %v111_v41 = vadd.f32 %v210_v39, %v103_v38 }
 0x170   :  { %v104_v40 = vmul.f32 %v209_v35, %v96_v37 }
 0x172   :  { %v112_v42 = vadd.f32 %v210_v39, %v104_v40 }
 0x174   :  { %v113_v43 = vpack.c.bf16 %v112_v42, %v111_v41 }
 0x176   :  { %226 = vmatmul.mubr.msk.bf16.vlgmr.msra.gmra.mrb[0].mxu0 %vm54_vm0, %v113_v43 }
 0x249   :  { %v173_v50 = vpop.f32.mrb[0].mxu0 }
 0x24a   :  { %v174_v51 = vadd.f32 %v173_v50, %v123_v49  ;;  %v227_v52 = vpop.f32.mrb[1].mxu0 }
 0x24b   :  { %v176_v53 = vpop.f32.mrb[2].mxu0 }
 0x24c   :  { %v216_v54 = vpack.c.bf16 %v174_v51, %v174_v51  ;;  %v177_v55 = vadd.f32 %v176_v53, %v123_v49  ;;  %v228_v56 = vpop.f32.mrb[3].mxu0 }
 0x24e   :  { %v217_v57 = vpack.c.bf16 %v177_v55, %v177_v55  ;;  %189 = vst.msk [vmem:[#allocation7] sm:$0xf] %vm188_vm6, %v216_v54 }
 0x250   :  { %190 = vst.msk [vmem:[#allocation7 + $0x4] sm:$0xf] %vm188_vm6, %v217_v57 }
 0x251   :  { %303 = shalt.err (!%p300_p6)
}
 0x252   :  { %s304_s27 = scalar_lea.hbm %s420_s5, 128 }
 0x253   :  { %p305_p7 = scmp.ne.s32.totalorder %s420_s5, %s304_s27  ;;  %p308_p8 = scmp.lt.u32.totalorder %s304_s27, %s420_s5 }
 0x255   :  { %p310_p9 = pnand %p308_p8, %p305_p7 }
 0x257   :  { %313 = shalt.err (!%p310_p9)
}
 0x258   :  { %202 = dma.vmem_to_hbm [thread:$0]  %s197_s2, 128, %s420_s5, [#allocation4], %s324_s0, %s324_s0, %s325_s17  }
 0x259   :  { %318 = dma.done.wait [#allocation4], 128  }
 0x25a   :  { %319 = vsyncadd [#allocation4], 4294967168 }
 0x25b   :  { %206 = vsyncpa [#allocation3], 1 }
 0x25c   :  { %207 = vsyncpa [#allocation6], 1 }
 0x25d   :  { %208 = vsyncpa [#allocation4], 1 }

</bundles_post_ra>
